<compile_context>
chip_gen: v7x
topology: tpu7x:2x2x1
jax: 0.10.0
libtpu: 0.0.40
codegen_flags: <defaults>
</compile_context>

<pallas_src>
import functools

import jax
import jax.numpy as jnp
from jax.experimental import pallas as pl
from jax.experimental.pallas import tpu as pltpu

BN_EPS = 1e-5       # nn.BatchNorm1d / nn.BatchNorm2d default
NORM_EPS = 1e-12    # F.normalize default


# ----------------------------------------------------------------------------
# Fused MLPHead + projection head + classifier Pallas kernel (single block)
# ----------------------------------------------------------------------------
def _supcon_head_kernel(h_ref, w1_ref, bng_ref, bnb_ref, w2_ref, b2_ref,
                        hw1_ref, hb1_ref, hw2_ref, hb2_ref, fw_ref, fb_ref,
                        logits_ref, featc_ref, *, eps, norm_eps):
    f32 = jnp.float32
    bf16 = jnp.bfloat16

    # ---- encoder MLPHead layer 1: Linear(256->512) + BatchNorm1d + ReLU.
    # Bias is intentionally omitted: it cancels exactly in the BN mean
    # subtraction.  BN statistics are over the whole batch (full batch lives
    # in this single block).
    x = h_ref[...]                                                  # (N,256) bf16
    y = jnp.dot(x, w1_ref[...], preferred_element_type=f32)         # (N,512) f32
    mean = jnp.mean(y, axis=0, keepdims=True)                       # (1,512)
    centered = y - mean
    var = jnp.mean(centered * centered, axis=0, keepdims=True)      # biased var
    scale = bng_ref[...] * jax.lax.rsqrt(var + eps)
    y = jnp.maximum(centered * scale + bnb_ref[...], 0.0)           # BN + ReLU

    # ---- encoder MLPHead layer 2: Linear(512->256) -> feat.
    feat = jnp.dot(y.astype(bf16), w2_ref[...],
                   preferred_element_type=f32) + b2_ref[...]        # (N,256) f32
    feat_b = feat.astype(bf16)                                      # reused twice

    # ---- projection head layer 1: Linear(256->256) + ReLU.
    hh = jnp.dot(feat_b, hw1_ref[...],
                 preferred_element_type=f32) + hb1_ref[...]
    hh = jnp.maximum(hh, 0.0)

    # ---- projection head layer 2: Linear(256->128) + F.normalize(dim=1).
    z = jnp.dot(hh.astype(bf16), hw2_ref[...],
                preferred_element_type=f32) + hb2_ref[...]          # (N,128)
    sq = jnp.sum(z * z, axis=1, keepdims=True)
    # 1 / max(||z||, eps) == rsqrt(max(||z||^2, eps^2))  (EUP, no divide)
    inv_norm = jax.lax.rsqrt(jnp.maximum(sq, norm_eps * norm_eps))
    featc_ref[...] = (z * inv_norm).astype(featc_ref.dtype)

    # ---- classifier fc: Linear(256->num_class), zero-padded to lane width.
    logits = jnp.dot(feat_b, fw_ref[...],
                     preferred_element_type=f32) + fb_ref[...]
    logits_ref[...] = logits.astype(logits_ref.dtype)


def supcon_head_fused(h, params):
    """Fused MLPHead + projection head + fc on a (N, 256) feature slab."""
    N, K = h.shape
    assert N >= 2, "training-mode BatchNorm1d needs batch size >= 2"
    mp, hp, fp = params["mlp_head"], params["head"], params["fc"]
    assert mp["w1"].shape[0] == K

    num_class = fp["w"].shape[1]
    d_fc_pad = max(128, ((num_class + 127) // 128) * 128)   # lane-dense output
    fw = jnp.pad(fp["w"], ((0, 0), (0, d_fc_pad - num_class)))
    fb = jnp.pad(fp["b"], (0, d_fc_pad - num_class))
    feat_dim = hp["w2"].shape[1]
    # L2-normalize epilogue needs the full feature row in one block.
    assert feat_dim <= 512

    bf = lambda a: a.astype(jnp.bfloat16)                    # MXU operands
    row = lambda v: v.reshape(1, -1).astype(jnp.float32)     # epilogue vectors

    inputs = (
        bf(h),
        bf(mp["w1"]), row(mp["bn_g"]), row(mp["bn_b"]),      # b1 omitted (BN)
        bf(mp["w2"]), row(mp["b2"]),
        bf(hp["w1"]), row(hp["b1"]),
        bf(hp["w2"]), row(hp["b2"]),
        bf(fw), row(fb),
    )

    vmem = pl.BlockSpec(memory_space=pltpu.MemorySpace.VMEM)
    logits_pad, feat_c = pl.pallas_call(
        functools.partial(_supcon_head_kernel, eps=BN_EPS, norm_eps=NORM_EPS),
        out_shape=(jax.ShapeDtypeStruct((N, d_fc_pad), jnp.float32),
                   jax.ShapeDtypeStruct((N, feat_dim), jnp.float32)),
        in_specs=[vmem] * len(inputs),
        out_specs=(vmem, vmem),
    )(*inputs)

    return logits_pad[:, :num_class], feat_c


# ----------------------------------------------------------------------------
# CNN encoder conv blocks (plain JAX / XLA)
# ----------------------------------------------------------------------------
# TODO(synk): the Conv2d / BatchNorm2d / MaxPool2d backbone is left to XLA
# (lax.conv_general_dilated, reduce_window) rather than hand-written Pallas
# conv kernels; the Pallas work targets the MLP/projection/fc chain.
def _conv2d(x, w, b):
    out = jax.lax.conv_general_dilated(
        x, w, window_strides=(1, 1), padding=[(1, 1), (1, 1)],
        dimension_numbers=("NCHW", "OIHW", "NCHW"))
    return out + b[None, :, None, None]


def _batchnorm2d(x, gamma, beta, eps=BN_EPS):
    mean = jnp.mean(x, axis=(0, 2, 3), keepdims=True)
    var = jnp.mean((x - mean) ** 2, axis=(0, 2, 3), keepdims=True)  # biased
    return ((x - mean) * jax.lax.rsqrt(var + eps)
            * gamma[None, :, None, None] + beta[None, :, None, None])


def _maxpool2x2(x):
    return jax.lax.reduce_window(
        x, -jnp.inf, jax.lax.max,
        window_dimensions=(1, 1, 2, 2), window_strides=(1, 1, 2, 2),
        padding="VALID")


def _encoder_cnn_blocks(params, x):
    h = x
    for name in ("block1", "block2", "block3"):
        p = params[name]
        h = _conv2d(h, p["conv1_w"], p["conv1_b"])
        h = jax.nn.relu(_batchnorm2d(h, p["bn1_g"], p["bn1_b"]))
        h = _conv2d(h, p["conv2_w"], p["conv2_b"])
        h = jax.nn.relu(_batchnorm2d(h, p["bn2_g"], p["bn2_b"]))
        h = _maxpool2x2(h)
    return h.reshape(h.shape[0], -1)      # (N, 16 * 4 * 4) = (N, 256)


# ----------------------------------------------------------------------------
# Full SupConNet forward (encoder='cnn', head='mlp')
# ----------------------------------------------------------------------------
def supcon_forward(params, x):
    h = _encoder_cnn_blocks(params, x)            # (N, 256)
    logits, feat_c = supcon_head_fused(h, params) # (N, 80), (N, 128) unit-norm
    return logits, feat_c


# Pure-JAX reference for the fused head.  quantize=True mirrors the kernel's
# bf16 MXU operands (f32 accumulation); quantize=False is full-f32 semantics.
def _head_ref(h, params, *, quantize):
    f32 = jnp.float32

    def dot(a, b):
        if quantize:
            return jnp.dot(a.astype(jnp.bfloat16), b.astype(jnp.bfloat16),
                           preferred_element_type=f32)
        return jnp.dot(a, b, precision=jax.lax.Precision.HIGHEST)

    mp, hp, fp = params["mlp_head"], params["head"], params["fc"]
    y = dot(h, mp["w1"]) + mp["b1"][None, :]          # bias kept: cancels in BN
    mean = jnp.mean(y, axis=0, keepdims=True)
    var = jnp.mean((y - mean) ** 2, axis=0, keepdims=True)
    y = ((y - mean) * jax.lax.rsqrt(var + BN_EPS)
         * mp["bn_g"][None, :] + mp["bn_b"][None, :])
    y = jnp.maximum(y, 0.0)
    feat = dot(y, mp["w2"]) + mp["b2"][None, :]
    hh = jnp.maximum(dot(feat, hp["w1"]) + hp["b1"][None, :], 0.0)
    z = dot(hh, hp["w2"]) + hp["b2"][None, :]
    norm = jnp.sqrt(jnp.sum(z * z, axis=1, keepdims=True))
    feat_c = z / jnp.maximum(norm, NORM_EPS)
    logits = dot(feat, fp["w"]) + fp["b"][None, :]
    return logits, feat_c


def supcon_forward_ref(params, x, *, quantize):
    h = _encoder_cnn_blocks(params, x)
    return _head_ref(h, params, quantize=quantize)


# ----------------------------------------------------------------------------
# Parameter init (He for conv/linear weights, BN gamma=1 / beta=0)
# ----------------------------------------------------------------------------
def init_params(key):
    keys = iter(jax.random.split(key, 32))

    def conv(cin, cout):
        fan_in = cin * 9
        w = jax.random.normal(next(keys), (cout, cin, 3, 3), jnp.float32) * jnp.sqrt(2.0 / fan_in)
        return w, jnp.zeros((cout,), jnp.float32)

    def linear(din, dout):
        w = jax.random.normal(next(keys), (din, dout), jnp.float32) * jnp.sqrt(2.0 / din)
        b = jax.random.normal(next(keys), (dout,), jnp.float32) * 0.01
        return w, b

    def block(cin, cmid, cout):
        w1, b1 = conv(cin, cmid)
        w2, b2 = conv(cmid, cout)
        return dict(conv1_w=w1, conv1_b=b1,
                    bn1_g=jnp.ones((cmid,), jnp.float32),
                    bn1_b=jnp.zeros((cmid,), jnp.float32),
                    conv2_w=w2, conv2_b=b2,
                    bn2_g=jnp.ones((cout,), jnp.float32),
                    bn2_b=jnp.zeros((cout,), jnp.float32))

    params = {
        "block1": block(3, 64, 64),
        "block2": block(64, 128, 128),
        "block3": block(128, 196, 16),
    }
    w1, b1 = linear(256, 512)
    w2, b2 = linear(512, 256)
    params["mlp_head"] = dict(w1=w1, b1=b1,
                              bn_g=jnp.ones((512,), jnp.float32),
                              bn_b=jnp.zeros((512,), jnp.float32),
                              w2=w2, b2=b2)
    hw1, hb1 = linear(256, 256)
    hw2, hb2 = linear(256, 128)
    params["head"] = dict(w1=hw1, b1=hb1, w2=hw2, b2=hb2)
    fw, fb = linear(256, 80)
    params["fc"] = dict(w=fw, b=fb)
    return params


if __name__ == "__main__":
    key = jax.random.PRNGKey(0)
    pkey, xkey = jax.random.split(key)
    params = init_params(pkey)

    batch = 8
    x = jax.random.normal(xkey, (batch, 3, 32, 32), dtype=jnp.float32)

    pallas_fwd = jax.jit(functools.partial(supcon_forward, params))
    ref_q_fwd = jax.jit(functools.partial(supcon_forward_ref, params, quantize=True))
    ref_f32_fwd = jax.jit(functools.partial(supcon_forward_ref, params, quantize=False))

    logits, feat_c = jax.block_until_ready(pallas_fwd(x))
    ref_logits, ref_feat_c = jax.block_until_ready(ref_q_fwd(x))
    f32_logits, f32_feat_c = jax.block_until_ready(ref_f32_fwd(x))

    assert logits.shape == (batch, 80), logits.shape
    assert feat_c.shape == (batch, 128), feat_c.shape
    # Kernel vs. reference with identical bf16 MXU operands (tight check of the
    # fusion / padding / BN-bias-cancellation / normalize semantics).
    assert jnp.allclose(logits, ref_logits, atol=2e-2, rtol=2e-2), "logits mismatch"
    assert jnp.allclose(feat_c, ref_feat_c, atol=2e-2, rtol=2e-2), "feat_c mismatch"
    # Coarse semantic check against the full-f32 PyTorch-equivalent reference
    # (generous tolerance only covers intentional bf16 MXU quantization).
    assert jnp.allclose(logits, f32_logits, atol=1e-1, rtol=1e-1), "logits far from f32 ref"
    assert jnp.allclose(feat_c, f32_feat_c, atol=1e-1, rtol=1e-1), "feat_c far from f32 ref"
    assert jnp.allclose(jnp.sum(feat_c * feat_c, axis=1), 1.0, atol=1e-3), "not unit-norm"

    print("KERNEL_OK")
</pallas_src>

<mosaic_0001>
module attributes {stable_mosaic.version = 11 : i64} {
  func.func @_supcon_head_kernel(%arg0: memref<8x256xbf16, #tpu.memory_space<vmem>>, %arg1: memref<256x512xbf16, #tpu.memory_space<vmem>>, %arg2: memref<1x512xf32, #tpu.memory_space<vmem>>, %arg3: memref<1x512xf32, #tpu.memory_space<vmem>>, %arg4: memref<512x256xbf16, #tpu.memory_space<vmem>>, %arg5: memref<1x256xf32, #tpu.memory_space<vmem>>, %arg6: memref<256x256xbf16, #tpu.memory_space<vmem>>, %arg7: memref<1x256xf32, #tpu.memory_space<vmem>>, %arg8: memref<256x128xbf16, #tpu.memory_space<vmem>>, %arg9: memref<1x128xf32, #tpu.memory_space<vmem>>, %arg10: memref<256x128xbf16, #tpu.memory_space<vmem>>, %arg11: memref<1x128xf32, #tpu.memory_space<vmem>>, %arg12: memref<8x128xf32, #tpu.memory_space<vmem>>, %arg13: memref<8x128xf32, #tpu.memory_space<vmem>>) attributes {dimension_semantics = [], scalar_prefetch = 0 : i64, scratch_operands = 0 : i64, tpu.core_type = #tpu.core_type<tc>} {
    %c0 = arith.constant 0 : index
    %c0_0 = arith.constant 0 : index
    %0 = vector.load %arg0[%c0, %c0_0] : memref<8x256xbf16, #tpu.memory_space<vmem>>, vector<8x256xbf16>
    %c0_1 = arith.constant 0 : index
    %c0_2 = arith.constant 0 : index
    %1 = vector.load %arg1[%c0_1, %c0_2] : memref<256x512xbf16, #tpu.memory_space<vmem>>, vector<256x512xbf16>
    %cst = arith.constant dense<0.000000e+00> : vector<8x512xf32>
    %2 = tpu.matmul %0, %1, %cst {dimension_numbers = #tpu.dot_dimension_numbers<[1], [0], [0], [1], [0, 0, 1, 1], [], []>} : vector<8x256xbf16>, vector<256x512xbf16>, vector<8x512xf32> -> vector<8x512xf32>
    %cst_3 = arith.constant dense<0.000000e+00> : vector<512xf32>
    %3 = vector.multi_reduction <add>, %2, %cst_3 [0] : vector<8x512xf32> to vector<512xf32>
    %4 = vector.shape_cast %3 : vector<512xf32> to vector<1x512xf32>
    %cst_4 = arith.constant 8.000000e+00 : f32
    %5 = vector.broadcast %cst_4 : f32 to vector<1x512xf32>
    %6 = arith.divf %4, %5 : vector<1x512xf32>
    %7 = vector.broadcast %6 : vector<1x512xf32> to vector<8x512xf32>
    %8 = arith.subf %2, %7 : vector<8x512xf32>
    %9 = arith.mulf %8, %8 : vector<8x512xf32>
    %cst_5 = arith.constant dense<0.000000e+00> : vector<512xf32>
    %10 = vector.multi_reduction <add>, %9, %cst_5 [0] : vector<8x512xf32> to vector<512xf32>
    %11 = vector.shape_cast %10 : vector<512xf32> to vector<1x512xf32>
    %cst_6 = arith.constant 8.000000e+00 : f32
    %12 = vector.broadcast %cst_6 : f32 to vector<1x512xf32>
    %13 = arith.divf %11, %12 : vector<1x512xf32>
    %c0_7 = arith.constant 0 : index
    %c0_8 = arith.constant 0 : index
    %14 = vector.load %arg2[%c0_7, %c0_8] : memref<1x512xf32, #tpu.memory_space<vmem>>, vector<1x512xf32>
    %cst_9 = arith.constant 9.99999974E-6 : f32
    %15 = vector.broadcast %cst_9 : f32 to vector<1x512xf32>
    %16 = arith.addf %13, %15 : vector<1x512xf32>
    %17 = math.rsqrt %16 : vector<1x512xf32>
    %18 = arith.mulf %14, %17 : vector<1x512xf32>
    %19 = vector.broadcast %18 : vector<1x512xf32> to vector<8x512xf32>
    %20 = arith.mulf %8, %19 : vector<8x512xf32>
    %c0_10 = arith.constant 0 : index
    %c0_11 = arith.constant 0 : index
    %21 = vector.load %arg3[%c0_10, %c0_11] : memref<1x512xf32, #tpu.memory_space<vmem>>, vector<1x512xf32>
    %22 = vector.broadcast %21 : vector<1x512xf32> to vector<8x512xf32>
    %23 = arith.addf %20, %22 : vector<8x512xf32>
    %cst_12 = arith.constant 0.000000e+00 : f32
    %24 = vector.broadcast %cst_12 : f32 to vector<8x512xf32>
    %25 = arith.maximumf %23, %24 : vector<8x512xf32>
    %26 = arith.truncf %25 : vector<8x512xf32> to vector<8x512xbf16>
    %c0_13 = arith.constant 0 : index
    %c0_14 = arith.constant 0 : index
    %27 = vector.load %arg4[%c0_13, %c0_14] : memref<512x256xbf16, #tpu.memory_space<vmem>>, vector<512x256xbf16>
    %cst_15 = arith.constant dense<0.000000e+00> : vector<8x256xf32>
    %28 = tpu.matmul %26, %27, %cst_15 {dimension_numbers = #tpu.dot_dimension_numbers<[1], [0], [0], [1], [0, 0, 1, 1], [], []>} : vector<8x512xbf16>, vector<512x256xbf16>, vector<8x256xf32> -> vector<8x256xf32>
    %c0_16 = arith.constant 0 : index
    %c0_17 = arith.constant 0 : index
    %29 = vector.load %arg5[%c0_16, %c0_17] : memref<1x256xf32, #tpu.memory_space<vmem>>, vector<1x256xf32>
    %30 = vector.broadcast %29 : vector<1x256xf32> to vector<8x256xf32>
    %31 = arith.addf %28, %30 : vector<8x256xf32>
    %32 = arith.truncf %31 : vector<8x256xf32> to vector<8x256xbf16>
    %c0_18 = arith.constant 0 : index
    %c0_19 = arith.constant 0 : index
    %33 = vector.load %arg6[%c0_18, %c0_19] : memref<256x256xbf16, #tpu.memory_space<vmem>>, vector<256x256xbf16>
    %cst_20 = arith.constant dense<0.000000e+00> : vector<8x256xf32>
    %34 = tpu.matmul %32, %33, %cst_20 {dimension_numbers = #tpu.dot_dimension_numbers<[1], [0], [0], [1], [0, 0, 1, 1], [], []>} : vector<8x256xbf16>, vector<256x256xbf16>, vector<8x256xf32> -> vector<8x256xf32>
    %c0_21 = arith.constant 0 : index
    %c0_22 = arith.constant 0 : index
    %35 = vector.load %arg7[%c0_21, %c0_22] : memref<1x256xf32, #tpu.memory_space<vmem>>, vector<1x256xf32>
    %36 = vector.broadcast %35 : vector<1x256xf32> to vector<8x256xf32>
    %37 = arith.addf %34, %36 : vector<8x256xf32>
    %cst_23 = arith.constant 0.000000e+00 : f32
    %38 = vector.broadcast %cst_23 : f32 to vector<8x256xf32>
    %39 = arith.maximumf %37, %38 : vector<8x256xf32>
    %40 = arith.truncf %39 : vector<8x256xf32> to vector<8x256xbf16>
    %c0_24 = arith.constant 0 : index
    %c0_25 = arith.constant 0 : index
    %41 = vector.load %arg8[%c0_24, %c0_25] : memref<256x128xbf16, #tpu.memory_space<vmem>>, vector<256x128xbf16>
    %cst_26 = arith.constant dense<0.000000e+00> : vector<8x128xf32>
    %42 = tpu.matmul %40, %41, %cst_26 {dimension_numbers = #tpu.dot_dimension_numbers<[1], [0], [0], [1], [0, 0, 1, 1], [], []>} : vector<8x256xbf16>, vector<256x128xbf16>, vector<8x128xf32> -> vector<8x128xf32>
    %c0_27 = arith.constant 0 : index
    %c0_28 = arith.constant 0 : index
    %43 = vector.load %arg9[%c0_27, %c0_28] : memref<1x128xf32, #tpu.memory_space<vmem>>, vector<1x128xf32>
    %44 = vector.broadcast %43 : vector<1x128xf32> to vector<8x128xf32>
    %45 = arith.addf %42, %44 : vector<8x128xf32>
    %46 = arith.mulf %45, %45 : vector<8x128xf32>
    %cst_29 = arith.constant dense<0.000000e+00> : vector<8xf32>
    %47 = vector.multi_reduction <add>, %46, %cst_29 [1] : vector<8x128xf32> to vector<8xf32>
    %48 = vector.shape_cast %47 : vector<8xf32> to vector<8x1xf32>
    %cst_30 = arith.constant 1.000000e-24 : f32
    %49 = vector.broadcast %cst_30 : f32 to vector<8x1xf32>
    %50 = arith.maximumf %48, %49 : vector<8x1xf32>
    %51 = math.rsqrt %50 : vector<8x1xf32>
    %52 = vector.broadcast %51 : vector<8x1xf32> to vector<8x128xf32>
    %53 = arith.mulf %45, %52 : vector<8x128xf32>
    %c0_31 = arith.constant 0 : index
    %c0_32 = arith.constant 0 : index
    %54 = vector.load %arg13[%c0_31, %c0_32] : memref<8x128xf32, #tpu.memory_space<vmem>>, vector<8x128xf32>
    tpu.vector_store %arg13[%c0_31, %c0_32], %53 {strides = array<i32>} : memref<8x128xf32, #tpu.memory_space<vmem>>, vector<8x128xf32>,
    %c0_33 = arith.constant 0 : index
    %c0_34 = arith.constant 0 : index
    %55 = vector.load %arg10[%c0_33, %c0_34] : memref<256x128xbf16, #tpu.memory_space<vmem>>, vector<256x128xbf16>
    %cst_35 = arith.constant dense<0.000000e+00> : vector<8x128xf32>
    %56 = tpu.matmul %32, %55, %cst_35 {dimension_numbers = #tpu.dot_dimension_numbers<[1], [0], [0], [1], [0, 0, 1, 1], [], []>} : vector<8x256xbf16>, vector<256x128xbf16>, vector<8x128xf32> -> vector<8x128xf32>
    %c0_36 = arith.constant 0 : index
    %c0_37 = arith.constant 0 : index
    %57 = vector.load %arg11[%c0_36, %c0_37] : memref<1x128xf32, #tpu.memory_space<vmem>>, vector<1x128xf32>
    %58 = vector.broadcast %57 : vector<1x128xf32> to vector<8x128xf32>
    %59 = arith.addf %56, %58 : vector<8x128xf32>
    %c0_38 = arith.constant 0 : index
    %c0_39 = arith.constant 0 : index
    %60 = vector.load %arg12[%c0_38, %c0_39] : memref<8x128xf32, #tpu.memory_space<vmem>>, vector<8x128xf32>
    tpu.vector_store %arg12[%c0_38, %c0_39], %59 {strides = array<i32>} : memref<8x128xf32, #tpu.memory_space<vmem>>, vector<8x128xf32>,
    return
  }
}

</mosaic_0001>

<bundles_post_ra>
// kernel: supcon_forward.1
= control target key start
LH: loop header
LB: loop body
LE: loop exit
PB: predicated region body
PF: predicated region fallthrough
CT: control target
= control target key end

     0   :  { %19 = vsyncpa [#allocation3], 0  ;;  %s3132_s0 = inlined_call_operand.vmem [shape: bf16[8,256], index: 0, kind: input, shape index: {}]   ;;  %s3133_s1 = inlined_call_operand.vmem [shape: bf16[256,512], index: 1, kind: input, shape index: {}]   ;;  %s3134_s2 = inlined_call_operand.vmem [shape: f32[1,512], index: 2, kind: input, shape index: {}]   ;;  %s3135_s3 = inlined_call_operand.vmem [shape: f32[1,512], index: 3, kind: input, shape index: {}]   ;;  %s3136_s4 = inlined_call_operand.vmem [shape: bf16[512,256], index: 4, kind: input, shape index: {}]   ;;  %s3137_s5 = inlined_call_operand.vmem [shape: f32[1,256], index: 5, kind: input, shape index: {}]   ;;  %s3138_s6 = inlined_call_operand.vmem [shape: bf16[256,256], index: 6, kind: input, shape index: {}]   ;;  %s3139_s7 = inlined_call_operand.vmem [shape: f32[1,256], index: 7, kind: input, shape index: {}]   ;;  %s3140_s8 = inlined_call_operand.vmem [shape: bf16[256,128], index: 8, kind: input, shape index: {}]   ;;  %s3141_s9 = inlined_call_operand.vmem [shape: f32[1,128], index: 9, kind: input, shape index: {}]   ;;  %s3142_s10 = inlined_call_operand.vmem [shape: bf16[256,128], index: 10, kind: input, shape index: {}]   ;;  %s3143_s11 = inlined_call_operand.vmem [shape: f32[1,128], index: 11, kind: input, shape index: {}]   ;;  %s3144_s12 = inlined_call_operand.hbm [shape: f32[8,128], index: 12, kind: output, shape index: {0}]   ;;  %s3145_s13 = inlined_call_operand.hbm [shape: f32[8,128], index: 13, kind: output, shape index: {1}]  }
   0x1   :  { %v2047_v0 = vld [vmem:[%s3133_s1 + $0x4] ss:$16 sps:$4 sm:$0xff]   ;;  %v2049_v1 = vld [vmem:[%s3133_s1 + $0xc] ss:$16 sps:$4 sm:$0xff]   ;;  %v2051_v2 = vld [vmem:[%s3133_s1] ss:$16 sps:$4 sm:$0xff]  }
   0x2   :  { %438 = vmatprep.subr.bf16.mxu0 %v2047_v0  ;;  %v2052_v3 = vld [vmem:[%s3133_s1 + $0x8] ss:$16 sps:$4 sm:$0xff]   ;;  %479 = vmatprep.subr.bf16.mxu1 %v2049_v1  ;;  %v2053_v4 = vld [vmem:[%s3133_s1 + $0x24] ss:$16 sps:$4 sm:$0xff]   ;;  %v2055_v5 = vld [vmem:[%s3133_s1 + $0x2c] ss:$16 sps:$4 sm:$0xff]  }
   0x3   :  { %439 = vmatpush1.bf16.msra.mxu0 %v2051_v2  ;;  %480 = vmatpush1.bf16.msra.mxu1 %v2052_v3  ;;  %v2057_v6 = vld [vmem:[%s3133_s1 + $0x20] ss:$16 sps:$4 sm:$0xff]   ;;  %v2058_v7 = vld [vmem:[%s3133_s1 + $0x28] ss:$16 sps:$4 sm:$0xff]   ;;  %v2059_v8 = vld [vmem:[%s3133_s1 + $0x44] ss:$16 sps:$4 sm:$0xff]  }
   0x4   :  { %440 = vmatprep.subr.bf16.mxu0 %v2053_v4  ;;  %481 = vmatprep.subr.bf16.mxu1 %v2055_v5  ;;  %v2061_v9 = vld [vmem:[%s3133_s1 + $0x4c] ss:$16 sps:$4 sm:$0xff]   ;;  %v2063_v10 = vld [vmem:[%s3133_s1 + $0x40] ss:$16 sps:$4 sm:$0xff]   ;;  %v2064_v11 = vld [vmem:[%s3133_s1 + $0x48] ss:$16 sps:$4 sm:$0xff]  }
   0x5   :  { %v2065_v12 = vld [vmem:[%s3133_s1 + $0x64] ss:$16 sps:$4 sm:$0xff]   ;;  %v2067_v13 = vld [vmem:[%s3133_s1 + $0x6c] ss:$16 sps:$4 sm:$0xff]   ;;  %v2069_v14 = vld [vmem:[%s3133_s1 + $0x60] ss:$16 sps:$4 sm:$0xff]  }
   0x6   :  { %v2070_v15 = vld [vmem:[%s3133_s1 + $0x68] ss:$16 sps:$4 sm:$0xff]   ;;  %v2071_v16 = vld [vmem:[%s3133_s1 + $0x84] ss:$16 sps:$4 sm:$0xff]   ;;  %v2073_v17 = vld [vmem:[%s3133_s1 + $0x8c] ss:$16 sps:$4 sm:$0xff]  }
   0x7   :  { %441 = vmatpush1.bf16.msra.mxu0 %v2057_v6  ;;  %482 = vmatpush1.bf16.msra.mxu1 %v2058_v7  ;;  %v2075_v18 = vld [vmem:[%s3133_s1 + $0x80] ss:$16 sps:$4 sm:$0xff]   ;;  %v2076_v19 = vld [vmem:[%s3133_s1 + $0x88] ss:$16 sps:$4 sm:$0xff]   ;;  %v2077_v20 = vld [vmem:[%s3133_s1 + $0xa4] ss:$16 sps:$4 sm:$0xff]  }
   0x8   :  { %442 = vmatprep.subr.bf16.mxu0 %v2059_v8  ;;  %483 = vmatprep.subr.bf16.mxu1 %v2061_v9  ;;  %v2079_v21 = vld [vmem:[%s3133_s1 + $0xac] ss:$16 sps:$4 sm:$0xff]   ;;  %v2081_v22 = vld [vmem:[%s3133_s1 + $0xa0] ss:$16 sps:$4 sm:$0xff]   ;;  %v2082_v23 = vld [vmem:[%s3133_s1 + $0xa8] ss:$16 sps:$4 sm:$0xff]  }
   0x9   :  { %v2083_v24 = vld [vmem:[%s3133_s1 + $0xc4] ss:$16 sps:$4 sm:$0xff]   ;;  %v2085_v25 = vld [vmem:[%s3133_s1 + $0xcc] ss:$16 sps:$4 sm:$0xff]   ;;  %v2087_v26 = vld [vmem:[%s3133_s1 + $0xc0] ss:$16 sps:$4 sm:$0xff]  }
   0xa   :  { %v2088_v27 = vld [vmem:[%s3133_s1 + $0xc8] ss:$16 sps:$4 sm:$0xff]   ;;  %v2089_v28 = vld [vmem:[%s3133_s1 + $0xe4] ss:$16 sps:$4 sm:$0xff]   ;;  %v2091_v29 = vld [vmem:[%s3133_s1 + $0xec] ss:$16 sps:$4 sm:$0xff]  }
   0xb   :  { %443 = vmatpush1.bf16.msra.mxu0 %v2063_v10  ;;  %484 = vmatpush1.bf16.msra.mxu1 %v2064_v11  ;;  %v2093_v30 = vld [vmem:[%s3133_s1 + $0xe0] ss:$16 sps:$4 sm:$0xff]   ;;  %v2094_v31 = vld [vmem:[%s3133_s1 + $0xe8] ss:$16 sps:$4 sm:$0xff]   ;;  %v2095_v32 = vld [vmem:[%s3133_s1 + $0x104] ss:$16 sps:$4 sm:$0xff]  }
   0xc   :  { %444 = vmatprep.subr.bf16.mxu0 %v2065_v12  ;;  %485 = vmatprep.subr.bf16.mxu1 %v2067_v13  ;;  %v2097_v33 = vld [vmem:[%s3133_s1 + $0x10c] ss:$16 sps:$4 sm:$0xff]   ;;  %v2099_v34 = vld [vmem:[%s3133_s1 + $0x100] ss:$16 sps:$4 sm:$0xff]   ;;  %v2100_v35 = vld [vmem:[%s3133_s1 + $0x108] ss:$16 sps:$4 sm:$0xff]  }
   0xd   :  { %v2101_v36 = vld [vmem:[%s3133_s1 + $0x124] ss:$16 sps:$4 sm:$0xff]   ;;  %v2103_v37 = vld [vmem:[%s3133_s1 + $0x12c] ss:$16 sps:$4 sm:$0xff]   ;;  %v2105_v38 = vld [vmem:[%s3133_s1 + $0x120] ss:$16 sps:$4 sm:$0xff]  }
   0xe   :  { %v2106_v39 = vld [vmem:[%s3133_s1 + $0x128] ss:$16 sps:$4 sm:$0xff]   ;;  %v2107_v40 = vld [vmem:[%s3133_s1 + $0x144] ss:$16 sps:$4 sm:$0xff]   ;;  %v2109_v41 = vld [vmem:[%s3133_s1 + $0x14c] ss:$16 sps:$4 sm:$0xff]  }
   0xf   :  { %445 = vmatpush1.bf16.msra.mxu0 %v2069_v14  ;;  %486 = vmatpush1.bf16.msra.mxu1 %v2070_v15  ;;  %v2111_v42 = vld [vmem:[%s3133_s1 + $0x140] ss:$16 sps:$4 sm:$0xff]   ;;  %v2112_v43 = vld [vmem:[%s3133_s1 + $0x148] ss:$16 sps:$4 sm:$0xff]   ;;  %v2113_v44 = vld [vmem:[%s3133_s1 + $0x164] ss:$16 sps:$4 sm:$0xff]  }
  0x10   :  { %446 = vmatprep.subr.bf16.mxu0 %v2071_v16  ;;  %487 = vmatprep.subr.bf16.mxu1 %v2073_v17  ;;  %v2115_v45 = vld [vmem:[%s3133_s1 + $0x16c] ss:$16 sps:$4 sm:$0xff]   ;;  %v2117_v46 = vld [vmem:[%s3133_s1 + $0x160] ss:$16 sps:$4 sm:$0xff]   ;;  %v2118_v47 = vld [vmem:[%s3133_s1 + $0x168] ss:$16 sps:$4 sm:$0xff]  }
  0x11   :  { %v46_v48 = vld [vmem:[%s3132_s0] sm:$0xff]  ;;  %v2121_v50 = vld [vmem:[%s3133_s1 + $0x18c] ss:$16 sps:$4 sm:$0xff]   ;;  %v2124_v53 = vld [vmem:[%s3133_s1 + $0x188] ss:$16 sps:$4 sm:$0xff]  }
  0x12   :  { %v2119_v49 = vld [vmem:[%s3133_s1 + $0x184] ss:$16 sps:$4 sm:$0xff]   ;;  %v1799_v51 = vcombine.high %v46_v48, %v46_v48  ;;  %v2123_v52 = vld [vmem:[%s3133_s1 + $0x180] ss:$16 sps:$4 sm:$0xff]   ;;  %v2127_v55 = vld [vmem:[%s3133_s1 + $0x1ac] ss:$16 sps:$4 sm:$0xff]   ;;  %v1798_v2 = vcombine.low %v46_v48, %v46_v48 }
  0x13   :  { %447 = vmatpush1.bf16.msra.mxu0 %v2075_v18  ;;  %488 = vmatpush1.bf16.msra.mxu1 %v2076_v19  ;;  %v2125_v54 = vld [vmem:[%s3133_s1 + $0x1a4] ss:$16 sps:$4 sm:$0xff]   ;;  %v2129_v56 = vld [vmem:[%s3133_s1 + $0x1a0] ss:$16 sps:$4 sm:$0xff]   ;;  %v2130_v57 = vld [vmem:[%s3133_s1 + $0x1a8] ss:$16 sps:$4 sm:$0xff]  }
  0x14   :  { %448 = vmatprep.subr.bf16.mxu0 %v2077_v20  ;;  %489 = vmatprep.subr.bf16.mxu1 %v2079_v21  ;;  %v2131_v58 = vld [vmem:[%s3133_s1 + $0x1c4] ss:$16 sps:$4 sm:$0xff]   ;;  %v2133_v59 = vld [vmem:[%s3133_s1 + $0x1cc] ss:$16 sps:$4 sm:$0xff]   ;;  %v2135_v60 = vld [vmem:[%s3133_s1 + $0x1c0] ss:$16 sps:$4 sm:$0xff]  }
  0x15   :  { %470 = vmatprep.mubr.bf16.mxu0 %v1799_v51  ;;  %511 = vmatprep.mubr.bf16.mxu1 %v1799_v51  ;;  %v2136_v61 = vld [vmem:[%s3133_s1 + $0x1c8] ss:$16 sps:$4 sm:$0xff]   ;;  %v2137_v62 = vld [vmem:[%s3133_s1 + $0x1e4] ss:$16 sps:$4 sm:$0xff]   ;;  %v2139_v63 = vld [vmem:[%s3133_s1 + $0x1ec] ss:$16 sps:$4 sm:$0xff]  }
  0x16   :  { %v2141_v0 = vld [vmem:[%s3133_s1 + $0x1e0] ss:$16 sps:$4 sm:$0xff]   ;;  %v2142_v1 = vld [vmem:[%s3133_s1 + $0x1e8] ss:$16 sps:$4 sm:$0xff]  }
  0x17   :  { %449 = vmatpush1.bf16.msra.mxu0 %v2081_v22  ;;  %490 = vmatpush1.bf16.msra.mxu1 %v2082_v23 }
  0x18   :  { %450 = vmatprep.subr.bf16.mxu0 %v2083_v24  ;;  %491 = vmatprep.subr.bf16.mxu1 %v2085_v25 }
  0x1b   :  { %451 = vmatpush1.bf16.msra.mxu0 %v2087_v26  ;;  %492 = vmatpush1.bf16.msra.mxu1 %v2088_v27 }
  0x1c   :  { %452 = vmatprep.subr.bf16.mxu0 %v2089_v28  ;;  %493 = vmatprep.subr.bf16.mxu1 %v2091_v29 }
  0x1f   :  { %453 = vmatpush1.bf16.msra.mxu0 %v2093_v30  ;;  %494 = vmatpush1.bf16.msra.mxu1 %v2094_v31 }
  0x20   :  { %454 = vmatprep.subr.bf16.mxu0 %v2095_v32  ;;  %495 = vmatprep.subr.bf16.mxu1 %v2097_v33 }
  0x23   :  { %455 = vmatpush1.bf16.msra.mxu0 %v2099_v34  ;;  %496 = vmatpush1.bf16.msra.mxu1 %v2100_v35 }
  0x24   :  { %456 = vmatprep.subr.bf16.mxu0 %v2101_v36  ;;  %497 = vmatprep.subr.bf16.mxu1 %v2103_v37 }
  0x27   :  { %457 = vmatpush1.bf16.msra.mxu0 %v2105_v38  ;;  %498 = vmatpush1.bf16.msra.mxu1 %v2106_v39 }
  0x28   :  { %458 = vmatprep.subr.bf16.mxu0 %v2107_v40  ;;  %499 = vmatprep.subr.bf16.mxu1 %v2109_v41 }
  0x2b   :  { %459 = vmatpush1.bf16.msra.mxu0 %v2111_v42  ;;  %500 = vmatpush1.bf16.msra.mxu1 %v2112_v43 }
  0x2c   :  { %460 = vmatprep.subr.bf16.mxu0 %v2113_v44  ;;  %501 = vmatprep.subr.bf16.mxu1 %v2115_v45 }
  0x2f   :  { %461 = vmatpush1.bf16.msra.mxu0 %v2117_v46  ;;  %502 = vmatpush1.bf16.msra.mxu1 %v2118_v47 }
  0x30   :  { %462 = vmatprep.subr.bf16.mxu0 %v2119_v49  ;;  %503 = vmatprep.subr.bf16.mxu1 %v2121_v50 }
  0x33   :  { %463 = vmatpush1.bf16.msra.mxu0 %v2123_v52  ;;  %504 = vmatpush1.bf16.msra.mxu1 %v2124_v53 }
  0x34   :  { %464 = vmatprep.subr.bf16.mxu0 %v2125_v54  ;;  %505 = vmatprep.subr.bf16.mxu1 %v2127_v55 }
  0x37   :  { %465 = vmatpush1.bf16.msra.mxu0 %v2129_v56  ;;  %506 = vmatpush1.bf16.msra.mxu1 %v2130_v57 }
  0x38   :  { %466 = vmatprep.subr.bf16.mxu0 %v2131_v58  ;;  %507 = vmatprep.subr.bf16.mxu1 %v2133_v59 }
  0x3b   :  { %467 = vmatpush1.bf16.msra.mxu0 %v2135_v60  ;;  %508 = vmatpush1.bf16.msra.mxu1 %v2136_v61 }
  0x3c   :  { %468 = vmatprep.subr.bf16.mxu0 %v2137_v62  ;;  %509 = vmatprep.subr.bf16.mxu1 %v2139_v63 }
  0x3f   :  { %469 = vmatpush1.bf16.msra.mxu0 %v2141_v0  ;;  %510 = vmatpush1.bf16.msra.mxu1 %v2142_v1 }
  0x42   :  { %471 = vmatmul.mubr.bf16.vlgmr.msra.gmra.mrb[0].mxu0 %v1798_v2  ;;  %512 = vmatmul.mubr.bf16.vlgmr.msra.gmra.mrb[0].mxu1 %v1798_v2 }
  0x43   :  { %20 = vsyncpa [#allocation5], 0  ;;  %v2147_v3 = vld [vmem:[%s3136_s4 + $0x4] ss:$8 sps:$4 sm:$0xff]   ;;  %v2145_v4 = vld [vmem:[%s3136_s4] ss:$8 sps:$4 sm:$0xff]   ;;  %v603_v29 = vlaneseq }
  0x44   :  { %1079 = vmatprep.subr.bf16.mxu0 %v2147_v3  ;;  %v2150_v5 = vld [vmem:[%s3136_s4 + $0x14] ss:$8 sps:$4 sm:$0xff]   ;;  %v2148_v6 = vld [vmem:[%s3136_s4 + $0x10] ss:$8 sps:$4 sm:$0xff]   ;;  %v2153_v7 = vld [vmem:[%s3136_s4 + $0x24] ss:$8 sps:$4 sm:$0xff]  }
  0x45   :  { %1080 = vmatpush1.bf16.msra.mxu0 %v2145_v4  ;;  %v2151_v8 = vld [vmem:[%s3136_s4 + $0x20] ss:$8 sps:$4 sm:$0xff]   ;;  %v2156_v9 = vld [vmem:[%s3136_s4 + $0x34] ss:$8 sps:$4 sm:$0xff]   ;;  %v2154_v10 = vld [vmem:[%s3136_s4 + $0x30] ss:$8 sps:$4 sm:$0xff]  }
  0x46   :  { %1081 = vmatprep.subr.bf16.mxu0 %v2150_v5  ;;  %v2159_v11 = vld [vmem:[%s3136_s4 + $0x44] ss:$8 sps:$4 sm:$0xff]   ;;  %v2157_v12 = vld [vmem:[%s3136_s4 + $0x40] ss:$8 sps:$4 sm:$0xff]   ;;  %v2162_v13 = vld [vmem:[%s3136_s4 + $0x54] ss:$8 sps:$4 sm:$0xff]  }
  0x47   :  { %v2160_v14 = vld [vmem:[%s3136_s4 + $0x50] ss:$8 sps:$4 sm:$0xff]   ;;  %v2165_v15 = vld [vmem:[%s3136_s4 + $0x64] ss:$8 sps:$4 sm:$0xff]   ;;  %v2163_v16 = vld [vmem:[%s3136_s4 + $0x60] ss:$8 sps:$4 sm:$0xff]  }
  0x48   :  { %v2168_v17 = vld [vmem:[%s3136_s4 + $0x74] ss:$8 sps:$4 sm:$0xff]   ;;  %v2166_v18 = vld [vmem:[%s3136_s4 + $0x70] ss:$8 sps:$4 sm:$0xff]   ;;  %v2171_v19 = vld [vmem:[%s3136_s4 + $0x84] ss:$8 sps:$4 sm:$0xff]  }
  0x49   :  { %1082 = vmatpush1.bf16.msra.mxu0 %v2148_v6  ;;  %v2169_v20 = vld [vmem:[%s3136_s4 + $0x80] ss:$8 sps:$4 sm:$0xff]   ;;  %v2174_v21 = vld [vmem:[%s3136_s4 + $0x94] ss:$8 sps:$4 sm:$0xff]   ;;  %v2172_v22 = vld [vmem:[%s3136_s4 + $0x90] ss:$8 sps:$4 sm:$0xff]  }
  0x4a   :  { %1083 = vmatprep.subr.bf16.mxu0 %v2153_v7  ;;  %v2177_v23 = vld [vmem:[%s3136_s4 + $0xa4] ss:$8 sps:$4 sm:$0xff]   ;;  %v2175_v24 = vld [vmem:[%s3136_s4 + $0xa0] ss:$8 sps:$4 sm:$0xff]   ;;  %v2180_v25 = vld [vmem:[%s3136_s4 + $0xb4] ss:$8 sps:$4 sm:$0xff]  }
  0x4b   :  { %v2178_v26 = vld [vmem:[%s3136_s4 + $0xb0] ss:$8 sps:$4 sm:$0xff]   ;;  %v2183_v27 = vld [vmem:[%s3136_s4 + $0xc4] ss:$8 sps:$4 sm:$0xff]   ;;  %v2181_v28 = vld [vmem:[%s3136_s4 + $0xc0] ss:$8 sps:$4 sm:$0xff]  }
  0x4c   :  { %v2186_v30 = vld [vmem:[%s3136_s4 + $0xd4] ss:$8 sps:$4 sm:$0xff]   ;;  %v2184_v31 = vld [vmem:[%s3136_s4 + $0xd0] ss:$8 sps:$4 sm:$0xff]   ;;  %v2731_v32 = vshrl.u32 %v603_v29, 7  ;;  %s2380_s25 = smov [#allocation2]  }
  0x4d   :  { %1084 = vmatpush1.bf16.msra.mxu0 %v2151_v8  ;;  %v2189_v33 = vld [vmem:[%s3136_s4 + $0xe4] ss:$8 sps:$4 sm:$0xff]   ;;  %v2187_v34 = vld [vmem:[%s3136_s4 + $0xe0] ss:$8 sps:$4 sm:$0xff]   ;;  %v2192_v37 = vld [vmem:[%s3136_s4 + $0xf4] ss:$8 sps:$4 sm:$0xff]  }
  0x4e   :  { %1085 = vmatprep.subr.bf16.mxu0 %v2156_v9  ;;  %v2742_v35 = vld [vmem:[%s3135_s3] sm:$0xf]  ;;  %v635_v36 = vsub.s32 2, %v2731_v32  ;;  %v2190_v38 = vld [vmem:[%s3136_s4 + $0xf0] ss:$8 sps:$4 sm:$0xff]   ;;  %s1776_s26 = sshll.u32 %s2380_s25, 4  ;;  %s1777_s26 = int_to_ptr.vmem [resolvable:$true] %s1776_s26 }
  0x4f   :  { %v2195_v40 = vld [vmem:[%s3136_s4 + $0x104] ss:$8 sps:$4 sm:$0xff]   ;;  %v2241_v61 = vld [vmem:[%s3138_s6] ss:$8 sps:$4 sm:$0xff]   ;;  %v2246_v1 = vld [vmem:[%s3138_s6 + $0x14] ss:$8 sps:$4 sm:$0xff]   ;;  %p2336_p1 = scmp.lt.s32.totalorder %s1777_s26, %s1777_s26 }
  0x50   :  { %v2754_v39 = vrot.slane %v2742_v35, %v635_v36  ;;  %v2243_v62 = vld [vmem:[%s3138_s6 + $0x4] ss:$8 sps:$4 sm:$0xff]   ;;  %v2244_v6 = vld [vmem:[%s3138_s6 + $0x10] ss:$8 sps:$4 sm:$0xff]  }
  0x51   :  { %1086 = vmatpush1.bf16.msra.mxu0 %v2154_v10  ;;  %1367 = vmatprep.subr.bf16.mxu1 %v2243_v62  ;;  %v2249_v9 = vld [vmem:[%s3138_s6 + $0x24] ss:$8 sps:$4 sm:$0xff]  }
  0x52   :  { %1087 = vmatprep.subr.bf16.mxu0 %v2159_v11  ;;  %1368 = vmatpush1.bf16.msra.mxu1 %v2241_v61  ;;  %v2255_v29 = vld [vmem:[%s3138_s6 + $0x44] ss:$8 sps:$4 sm:$0xff]  }
  0x53   :  { %1369 = vmatprep.subr.bf16.mxu1 %v2246_v1 }
  0x55   :  { %1088 = vmatpush1.bf16.msra.mxu0 %v2157_v12 }
  0x56   :  { %1089 = vmatprep.subr.bf16.mxu0 %v2162_v13  ;;  %1370 = vmatpush1.bf16.msra.mxu1 %v2244_v6  ;;  %v2262_v6 = vld [vmem:[%s3138_s6 + $0x70] ss:$8 sps:$4 sm:$0xff]  }
  0x57   :  { %1371 = vmatprep.subr.bf16.mxu1 %v2249_v9  ;;  %v2267_v9 = vld [vmem:[%s3138_s6 + $0x84] ss:$8 sps:$4 sm:$0xff]  }
  0x59   :  { %1090 = vmatpush1.bf16.msra.mxu0 %v2160_v14 }
  0x5a   :  { %1091 = vmatprep.subr.bf16.mxu0 %v2165_v15 }
  0x5d   :  { %1092 = vmatpush1.bf16.msra.mxu0 %v2163_v16  ;;  %v2247_v16 = vld [vmem:[%s3138_s6 + $0x20] ss:$8 sps:$4 sm:$0xff]  }
  0x5e   :  { %1093 = vmatprep.subr.bf16.mxu0 %v2168_v17  ;;  %1372 = vmatpush1.bf16.msra.mxu1 %v2247_v16  ;;  %v2273_v16 = vld [vmem:[%s3138_s6 + $0xa4] ss:$8 sps:$4 sm:$0xff]  }
  0x61   :  { %1094 = vmatpush1.bf16.msra.mxu0 %v2166_v18 }
  0x62   :  { %1095 = vmatprep.subr.bf16.mxu0 %v2171_v19  ;;  %v2252_v19 = vld [vmem:[%s3138_s6 + $0x34] ss:$8 sps:$4 sm:$0xff]  }
  0x63   :  { %1373 = vmatprep.subr.bf16.mxu1 %v2252_v19 }
  0x65   :  { %1096 = vmatpush1.bf16.msra.mxu0 %v2169_v20 }
  0x66   :  { %1097 = vmatprep.subr.bf16.mxu0 %v2174_v21 }
  0x69   :  { %1098 = vmatpush1.bf16.msra.mxu0 %v2172_v22 }
  0x6a   :  { %1099 = vmatprep.subr.bf16.mxu0 %v2177_v23 }
  0x6d   :  { %1100 = vmatpush1.bf16.msra.mxu0 %v2175_v24 }
  0x6e   :  { %1101 = vmatprep.subr.bf16.mxu0 %v2180_v25 }
  0x71   :  { %1102 = vmatpush1.bf16.msra.mxu0 %v2178_v26  ;;  %v2250_v26 = vld [vmem:[%s3138_s6 + $0x30] ss:$8 sps:$4 sm:$0xff]  }
  0x72   :  { %1103 = vmatprep.subr.bf16.mxu0 %v2183_v27  ;;  %1374 = vmatpush1.bf16.msra.mxu1 %v2250_v26 }
  0x73   :  { %1375 = vmatprep.subr.bf16.mxu1 %v2255_v29 }
  0x75   :  { %1104 = vmatpush1.bf16.msra.mxu0 %v2181_v28 }
  0x76   :  { %1105 = vmatprep.subr.bf16.mxu0 %v2186_v30 }
  0x79   :  { %1106 = vmatpush1.bf16.msra.mxu0 %v2184_v31 }
  0x7a   :  { %1107 = vmatprep.subr.bf16.mxu0 %v2189_v33 }
  0x7d   :  { %1108 = vmatpush1.bf16.msra.mxu0 %v2187_v34 }
  0x7e   :  { %1109 = vmatprep.subr.bf16.mxu0 %v2192_v37 }
  0x81   :  { %1110 = vmatpush1.bf16.msra.mxu0 %v2190_v38 }
  0x82   :  { %1120 = vmatprep.subr.bf16.mxu0 %v2195_v40  ;;  %v2253_v40 = vld [vmem:[%s3138_s6 + $0x40] ss:$8 sps:$4 sm:$0xff]  }
  0x83   :  { %1376 = vmatpush1.bf16.msra.mxu1 %v2253_v40  ;;  %v585_v40 = vld [vmem:[%s3134_s2] sm:$0xf] }
 0x115   :  { %v472_v41 = vpop.f32.mrb[0].mxu0  ;;  %v513_v42 = vpop.f32.mrb[0].mxu1 }
 0x116   :  { %v520_v43 = vrot.slane %v472_v41, 4  ;;  %v532_v44 = vrot.slane %v513_v42, 4  ;;  %v474_v45 = vpop.f32.mrb[1].mxu0  ;;  %v515_v46 = vpop.f32.mrb[1].mxu1 }
 0x117   :  { %v526_v47 = vrot.slane %v474_v45, 4  ;;  %v538_v48 = vrot.slane %v515_v46, 4  ;;  %v476_v49 = vpop.f32.mrb[2].mxu0  ;;  %v517_v50 = vpop.f32.mrb[2].mxu1 }
 0x118   :  { %v521_v51 = vadd.f32 %v520_v43, %v472_v41  ;;  %v533_v52 = vadd.f32 %v532_v44, %v513_v42  ;;  %v477_v53 = vpop.f32.mrb[3].mxu0  ;;  %v518_v54 = vpop.f32.mrb[3].mxu1  ;;  %v2258_v43 = vld [vmem:[%s3138_s6 + $0x54] ss:$8 sps:$4 sm:$0xff]   ;;  %v2256_v50 = vld [vmem:[%s3138_s6 + $0x50] ss:$8 sps:$4 sm:$0xff]  }
 0x119   :  { %v527_v55 = vadd.f32 %v526_v47, %v474_v45  ;;  %v539_v56 = vadd.f32 %v538_v48, %v515_v46  ;;  %1377 = vmatprep.subr.bf16.mxu1 %v2258_v43  ;;  %v2261_v53 = vld [vmem:[%s3138_s6 + $0x64] ss:$8 sps:$4 sm:$0xff]   ;;  %v639_v43 = vsub.s32 3, %v2731_v32 }
 0x11a   :  { %v522_v57 = vrot.slane %v521_v51, 2  ;;  %v534_v58 = vrot.slane %v533_v52, 2  ;;  %1378 = vmatpush1.bf16.msra.mxu1 %v2256_v50 }
 0x11b   :  { %v528_v59 = vrot.slane %v527_v55, 2  ;;  %v540_v60 = vrot.slane %v539_v56, 2  ;;  %1379 = vmatprep.subr.bf16.mxu1 %v2261_v53  ;;  %v666_v50 = vrot.slane %v2742_v35, %v639_v43 }
 0x11c   :  { %v523_v63 = vadd.f32 %v522_v57, %v521_v51  ;;  %v535_v0 = vadd.f32 %v534_v58, %v533_v52 }
 0x11d   :  { %v529_v2 = vadd.f32 %v528_v59, %v527_v55  ;;  %v541_v3 = vadd.f32 %v540_v60, %v539_v56  ;;  %v2259_v60 = vld [vmem:[%s3138_s6 + $0x60] ss:$8 sps:$4 sm:$0xff]  }
 0x11e   :  { %v524_v4 = vrot.slane %v523_v63, 1  ;;  %v536_v5 = vrot.slane %v535_v0, 1  ;;  %1380 = vmatpush1.bf16.msra.mxu1 %v2259_v60 }
 0x11f   :  { %v530_v7 = vrot.slane %v529_v2, 1  ;;  %v542_v8 = vrot.slane %v541_v3, 1 }
 0x120   :  { %v525_v10 = vadd.f32 %v524_v4, %v523_v63  ;;  %v537_v11 = vadd.f32 %v536_v5, %v535_v0  ;;  %v2264_v63 = vld [vmem:[%s3138_s6 + $0x74] ss:$8 sps:$4 sm:$0xff]  }
 0x121   :  { %v531_v12 = vadd.f32 %v530_v7, %v529_v2  ;;  %v543_v13 = vadd.f32 %v542_v8, %v541_v3  ;;  %1381 = vmatprep.subr.bf16.mxu1 %v2264_v63 }
 0x122   :  { %v545_v14 = vmul.f32 0.125, %v525_v10  ;;  %v547_v15 = vmul.f32 0.125, %v537_v11  ;;  %1382 = vmatpush1.bf16.msra.mxu1 %v2262_v6  ;;  %v2265_v10 = vld [vmem:[%s3138_s6 + $0x80] ss:$8 sps:$4 sm:$0xff]   ;;  %v2379_v11 = vmov 1966171168  }
 0x123   :  { %v546_v17 = vmul.f32 0.125, %v531_v12  ;;  %v548_v18 = vmul.f32 0.125, %v543_v13  ;;  %v601_v12 = vunpack.c.l.s4 %v2379_v11  ;;  %1383 = vmatprep.subr.bf16.mxu1 %v2267_v9  ;;  %v2270_v13 = vld [vmem:[%s3138_s6 + $0x94] ss:$8 sps:$4 sm:$0xff]   ;;  %v2207_v6 = vld [vmem:[%s3136_s4 + $0x144] ss:$8 sps:$4 sm:$0xff]  }
 0x124   :  { %v2780_v20 = vsub.f32 %v472_v41, %v545_v14  ;;  %v2782_v21 = vsub.f32 %v513_v42, %v547_v15  ;;  %v2268_v14 = vld [vmem:[%s3138_s6 + $0x90] ss:$8 sps:$4 sm:$0xff]   ;;  %v2211_v11 = vld [vmem:[%s3136_s4 + $0x160] ss:$8 sps:$4 sm:$0xff]  }
 0x125   :  { %v2784_v22 = vsub.f32 %v474_v45, %v546_v17  ;;  %v2786_v23 = vsub.f32 %v515_v46, %v548_v18  ;;  %v602_v15 = vunpack.c.0.s8 %v601_v12  ;;  %v2271_v18 = vld [vmem:[%s3138_s6 + $0xa0] ss:$8 sps:$4 sm:$0xff]   ;;  %v2208_v9 = vld [vmem:[%s3136_s4 + $0x150] ss:$8 sps:$4 sm:$0xff]   ;;  %v2216_v12 = vld [vmem:[%s3136_s4 + $0x174] ss:$8 sps:$4 sm:$0xff]  }
 0x126   :  { %v553_v24 = vmul.f32 %v2780_v20, %v2780_v20  ;;  %v555_v25 = vmul.f32 %v2782_v21, %v2782_v21  ;;  %1384 = vmatpush1.bf16.msra.mxu1 %v2265_v10  ;;  %v2213_v10 = vld [vmem:[%s3136_s4 + $0x164] ss:$8 sps:$4 sm:$0xff]  }
 0x127   :  { %v554_v27 = vmul.f32 %v2784_v22, %v2784_v22  ;;  %v556_v28 = vmul.f32 %v2786_v23, %v2786_v23  ;;  %1385 = vmatprep.subr.bf16.mxu1 %v2270_v13  ;;  %v2214_v13 = vld [vmem:[%s3136_s4 + $0x170] ss:$8 sps:$4 sm:$0xff]  }
 0x128   :  { %v557_v30 = vrot.slane %v553_v24, 4  ;;  %v569_v31 = vrot.slane %v555_v25, 4 }
 0x129   :  { %v563_v33 = vrot.slane %v554_v27, 4  ;;  %v575_v34 = vrot.slane %v556_v28, 4 }
 0x12a   :  { %v558_v37 = vadd.f32 %v557_v30, %v553_v24  ;;  %v570_v38 = vadd.f32 %v569_v31, %v555_v25  ;;  %1386 = vmatpush1.bf16.msra.mxu1 %v2268_v14  ;;  %v605_v24 = vsub.s32 %v602_v15, %v2731_v32  ;;  %v2276_v25 = vld [vmem:[%s3138_s6 + $0xb4] ss:$8 sps:$4 sm:$0xff]   ;;  %v2274_v30 = vld [vmem:[%s3138_s6 + $0xb0] ss:$8 sps:$4 sm:$0xff]   ;;  %v2219_v14 = vld [vmem:[%s3136_s4 + $0x184] ss:$8 sps:$4 sm:$0xff]  }
 0x12b   :  { %v564_v41 = vadd.f32 %v563_v33, %v554_v27  ;;  %v576_v42 = vadd.f32 %v575_v34, %v556_v28  ;;  %1387 = vmatprep.subr.bf16.mxu1 %v2273_v16  ;;  %v2279_v33 = vld [vmem:[%s3138_s6 + $0xc4] ss:$8 sps:$4 sm:$0xff]   ;;  %v2217_v15 = vld [vmem:[%s3136_s4 + $0x180] ss:$8 sps:$4 sm:$0xff]   ;;  %v2222_v16 = vld [vmem:[%s3136_s4 + $0x194] ss:$8 sps:$4 sm:$0xff]  }
 0x12c   :  { %v559_v44 = vrot.slane %v558_v37, 2  ;;  %v571_v45 = vrot.slane %v570_v38, 2 }
 0x12d   :  { %v565_v46 = vrot.slane %v564_v41, 2  ;;  %v577_v47 = vrot.slane %v576_v42, 2 }
 0x12e   :  { %v560_v48 = vadd.f32 %v559_v44, %v558_v37  ;;  %v572_v49 = vadd.f32 %v571_v45, %v570_v38  ;;  %1388 = vmatpush1.bf16.msra.mxu1 %v2271_v18  ;;  %v2277_v38 = vld [vmem:[%s3138_s6 + $0xc0] ss:$8 sps:$4 sm:$0xff]   ;;  %v2862_v44 = vsub.s32 1, %v2731_v32  ;;  %v2865_v45 = vsub.s32 0, %v2731_v32  ;;  %v2225_v18 = vld [vmem:[%s3136_s4 + $0x1a4] ss:$8 sps:$4 sm:$0xff]  }
 0x12f   :  { %v566_v51 = vadd.f32 %v565_v46, %v564_v41  ;;  %v578_v52 = vadd.f32 %v577_v47, %v576_v42  ;;  %1389 = vmatprep.subr.bf16.mxu1 %v2276_v25  ;;  %v2282_v41 = vld [vmem:[%s3138_s6 + $0xd4] ss:$8 sps:$4 sm:$0xff]   ;;  %v2280_v47 = vld [vmem:[%s3138_s6 + $0xd0] ss:$8 sps:$4 sm:$0xff]  }
 0x130   :  { %v561_v54 = vrot.slane %v560_v48, 1  ;;  %v573_v55 = vrot.slane %v572_v49, 1  ;;  %v2226_v25 = vld [vmem:[%s3136_s4 + $0x1b0] ss:$8 sps:$4 sm:$0xff]  }
 0x131   :  { %v567_v56 = vrot.slane %v566_v51, 1  ;;  %v579_v57 = vrot.slane %v578_v52, 1 }
 0x132   :  { %v562_v58 = vadd.f32 %v561_v54, %v560_v48  ;;  %v574_v59 = vadd.f32 %v573_v55, %v572_v49  ;;  %1390 = vmatpush1.bf16.msra.mxu1 %v2274_v30  ;;  %v658_v48 = vrot.slane %v2742_v35, %v2862_v44  ;;  %v654_v49 = vrot.slane %v2742_v35, %v2865_v45  ;;  %v2237_v30 = vld [vmem:[%s3136_s4 + $0x1e4] ss:$8 sps:$4 sm:$0xff]  }
 0x133   :  { %v568_v61 = vadd.f32 %v567_v56, %v566_v51  ;;  %v580_v62 = vadd.f32 %v579_v57, %v578_v52  ;;  %1391 = vmatprep.subr.bf16.mxu1 %v2279_v33  ;;  %v2285_v51 = vld [vmem:[%s3138_s6 + $0xe4] ss:$8 sps:$4 sm:$0xff]   ;;  %v2240_v33 = vld [vmem:[%s3136_s4 + $0x1f4] ss:$8 sps:$4 sm:$0xff]  }
 0x134   :  { %v581_v0 = vmul.f32 0.125, %v562_v58  ;;  %v583_v1 = vmul.f32 0.125, %v574_v59  ;;  %v2283_v59 = vld [vmem:[%s3138_s6 + $0xe0] ss:$8 sps:$4 sm:$0xff]  }
 0x135   :  { %v582_v2 = vmul.f32 0.125, %v568_v61  ;;  %v584_v3 = vmul.f32 0.125, %v580_v62 }
 0x136   :  { %v586_v4 = vadd.f32 1e-05, %v581_v0  ;;  %v588_v5 = vadd.f32 1e-05, %v583_v1  ;;  %1392 = vmatpush1.bf16.msra.mxu1 %v2277_v38  ;;  %v2198_v0 = vld [vmem:[%s3136_s4 + $0x114] ss:$8 sps:$4 sm:$0xff]  }
 0x137   :  { %v587_v7 = vadd.f32 1e-05, %v582_v2  ;;  %v589_v8 = vadd.f32 1e-05, %v584_v3  ;;  %1393 = vmatprep.subr.bf16.mxu1 %v2282_v41  ;;  %v2201_v2 = vld [vmem:[%s3136_s4 + $0x124] ss:$8 sps:$4 sm:$0xff]  }
 0x138   :  { %2321 = vrsqrt.f32 %v586_v4  ;;  %v2199_v3 = vld [vmem:[%s3136_s4 + $0x120] ss:$8 sps:$4 sm:$0xff]   ;;  %v2204_v4 = vld [vmem:[%s3136_s4 + $0x134] ss:$8 sps:$4 sm:$0xff]   ;;  %v2286_v41 = vld [vmem:[%s3138_s6 + $0xf0] ss:$8 sps:$4 sm:$0xff]  }
 0x139   :  { %2323 = vrsqrt.f32 %v588_v5  ;;  %v2202_v5 = vld [vmem:[%s3136_s4 + $0x130] ss:$8 sps:$4 sm:$0xff]  }
 0x13a   :  { %2325 = vrsqrt.f32 %v587_v7  ;;  %1394 = vmatpush1.bf16.msra.mxu1 %v2280_v47  ;;  %v2205_v7 = vld [vmem:[%s3136_s4 + $0x140] ss:$8 sps:$4 sm:$0xff]  }
 0x13b   :  { %2327 = vrsqrt.f32 %v589_v8  ;;  %1395 = vmatprep.subr.bf16.mxu1 %v2285_v51  ;;  %v2210_v8 = vld [vmem:[%s3136_s4 + $0x154] ss:$8 sps:$4 sm:$0xff]  }
 0x13e   :  { %1396 = vmatpush1.bf16.msra.mxu1 %v2283_v59  ;;  %v2294_v59 = vld [vmem:[%s3140_s8 + $0x10] sm:$0xff]  }
 0x142   :  { %v2322_v17 = vpop.eup %2321 }
 0x143   :  { %v2324_v19 = vpop.eup %2323 }
 0x144   :  { %v2326_v26 = vpop.eup %2325 }
 0x145   :  { %v2328_v27 = vpop.eup %2327  ;;  %v598_v28 = vcombine.low %v2322_v17, %v2326_v26  ;;  %v2220_v17 = vld [vmem:[%s3136_s4 + $0x190] ss:$8 sps:$4 sm:$0xff]   ;;  %v2231_v26 = vld [vmem:[%s3136_s4 + $0x1c4] ss:$8 sps:$4 sm:$0xff]  }
 0x146   :  { %v599_v29 = vcombine.low %v2324_v19, %v2328_v27  ;;  %v2223_v19 = vld [vmem:[%s3136_s4 + $0x1a0] ss:$8 sps:$4 sm:$0xff]  }
 0x147   :  { %v606_v31 = vrot.slane %v598_v28, %v605_v24  ;;  %v2229_v27 = vld [vmem:[%s3136_s4 + $0x1c0] ss:$8 sps:$4 sm:$0xff]   ;;  %v2234_v28 = vld [vmem:[%s3136_s4 + $0x1d4] ss:$8 sps:$4 sm:$0xff]  }
 0x148   :  { %v613_v34 = vrot.slane %v599_v29, %v605_v24  ;;  %v2232_v29 = vld [vmem:[%s3136_s4 + $0x1d0] ss:$8 sps:$4 sm:$0xff]  }
 0x14a   :  { %v614_v37 = vcombine.low %v606_v31, %v613_v34  ;;  %v2235_v31 = vld [vmem:[%s3136_s4 + $0x1e0] ss:$8 sps:$4 sm:$0xff]   ;;  %v2238_v34 = vld [vmem:[%s3136_s4 + $0x1f0] ss:$8 sps:$4 sm:$0xff]  }
 0x14c   :  { %v621_v42 = vrot.slane %v614_v37, %v605_v24  ;;  %v2228_v24 = vld [vmem:[%s3136_s4 + $0x1b4] ss:$8 sps:$4 sm:$0xff]  }
 0x14e   :  { %v623_v46 = vmul.f32 %v621_v42, %v585_v40  ;;  %v2288_v40 = vld [vmem:[%s3138_s6 + $0xf4] ss:$8 sps:$4 sm:$0xff]   ;;  %v2289_v42 = vld [vmem:[%s3140_s8 + $0x40] sm:$0xff]  }
 0x14f   :  { %1397 = vmatprep.subr.bf16.mxu1 %v2288_v40 }
 0x150   :  { %v640_v52 = vrot.slane %v623_v46, %v639_v43  ;;  %v632_v53 = vrot.slane %v623_v46, %v2862_v44  ;;  %v628_v54 = vrot.slane %v623_v46, %v2865_v45  ;;  %v636_v55 = vrot.slane %v623_v46, %v635_v36  ;;  %1398 = vmatpush1.bf16.msra.mxu1 %v2286_v41  ;;  %v747_v43 = vld [vmem:[%s3137_s5] sm:$0x3] }
 0x151   :  { %1994 = vmatprep.subr.bf16.mxu1 %v2289_v42  ;;  %v752_v46 = vrot.slane %v747_v43, %v2865_v45  ;;  %v756_v47 = vrot.slane %v747_v43, %v2862_v44 }
 0x152   :  { %v648_v56 = vmul.f32 %v640_v52, %v2786_v23  ;;  %v646_v57 = vmul.f32 %v632_v53, %v2784_v22  ;;  %v645_v58 = vmul.f32 %v628_v54, %v2780_v20  ;;  %v647_v35 = vmul.f32 %v636_v55, %v2782_v21  ;;  %v2193_v20 = vld [vmem:[%s3136_s4 + $0x100] ss:$8 sps:$4 sm:$0xff]  }
 0x153   :  { %v2290_v55 = vld [vmem:[%s3140_s8] sm:$0xff]  }
 0x154   :  { %v672_v60 = vadd.f32 %v658_v48, %v646_v57  ;;  %v671_v61 = vadd.f32 %v654_v49, %v645_v58  ;;  %v674_v62 = vadd.f32 %v666_v50, %v648_v56  ;;  %v2890_v32 = vadd.f32 %v2754_v39, %v647_v35  ;;  %v2196_v39 = vld [vmem:[%s3136_s4 + $0x110] ss:$8 sps:$4 sm:$0xff]   ;;  %v2291_v57 = vld [vmem:[%s3140_s8 + $0x48] sm:$0xff]  }
 0x155   :  { %v2292_v58 = vld [vmem:[%s3140_s8 + $0x8] sm:$0xff]   ;;  %v2293_v35 = vld [vmem:[%s3140_s8 + $0x50] sm:$0xff]  }
 0x156   :  { %v676_v36 = vmax.f32 %v672_v60, 0.0  ;;  %v675_v23 = vmax.f32 %v671_v61, 0.0  ;;  %v678_v63 = vmax.f32 %v674_v62, 0.0  ;;  %v677_v37 = vmax.f32 %v2890_v32, 0.0  ;;  %v2295_v60 = vld [vmem:[%s3140_s8 + $0x58] sm:$0xff]   ;;  %v2297_v62 = vld [vmem:[%s3140_s8 + $0x60] sm:$0xff]  }
 0x157   :  { %v2296_v61 = vld [vmem:[%s3140_s8 + $0x18] sm:$0xff]   ;;  %v2298_v32 = vld [vmem:[%s3140_s8 + $0x20] sm:$0xff]  }
 0x158   :  { %v680_v22 = vpack.c.bf16 %v676_v36, %v676_v36  ;;  %v679_v21 = vpack.c.bf16 %v675_v23, %v675_v23  ;;  %v682_v1 = vpack.c.bf16 %v678_v63, %v678_v63  ;;  %v681_v38 = vpack.c.bf16 %v677_v37, %v677_v37  ;;  %v2299_v36 = vld [vmem:[%s3140_s8 + $0x68] sm:$0xff]   ;;  %v2301_v63 = vld [vmem:[%s3140_s8 + $0x70] sm:$0xff]  }
 0x159   :  { %v2300_v23 = vld [vmem:[%s3140_s8 + $0x28] sm:$0xff]  }
 0x15a   :  { %1111 = vmatprep.mubr.bf16.mxu0 %v680_v22  ;;  %v2302_v22 = vld [vmem:[%s3140_s8 + $0x30] sm:$0xff]  }
 0x15b   :  { %1112 = vmatmul.mubr.bf16.vlgmr.msra.gmra.mrb[4].mxu0 %v679_v21  ;;  %v2304_v21 = vld [vmem:[%s3140_s8 + $0x38] sm:$0xff]  }
 0x15c   :  { %1121 = vmatpush1.bf16.msra.mxu0 %v2193_v20  ;;  %1152 = vmatprep.mubr.bf16.mxu0 %v682_v1  ;;  %v2303_v20 = vld [vmem:[%s3140_s8 + $0x78] sm:$0xff]   ;;  %v1195_v1 = vld [vmem:[%s3139_s7] sm:$0x3] }
 0x15d   :  { %1122 = vmatprep.subr.bf16.mxu0 %v2198_v0  ;;  %v2305_v0 = vld [vmem:[%s3142_s10 + $0x40] sm:$0xff]  }
 0x160   :  { %1123 = vmatpush1.bf16.msra.mxu0 %v2196_v39  ;;  %v1200_v39 = vrot.slane %v1195_v1, %v2865_v45  ;;  %v2307_v45 = vld [vmem:[%s3142_s10 + $0x48] sm:$0xff]  }
 0x161   :  { %1124 = vmatprep.subr.bf16.mxu0 %v2201_v2  ;;  %v1204_v2 = vrot.slane %v1195_v1, %v2862_v44  ;;  %v2308_v44 = vld [vmem:[%s3142_s10 + $0x8] sm:$0xff]  }
 0x164   :  { %1125 = vmatpush1.bf16.msra.mxu0 %v2199_v3 }
 0x165   :  { %1126 = vmatprep.subr.bf16.mxu0 %v2204_v4 }
 0x168   :  { %1127 = vmatpush1.bf16.msra.mxu0 %v2202_v5 }
 0x169   :  { %1128 = vmatprep.subr.bf16.mxu0 %v2207_v6 }
 0x16c   :  { %1129 = vmatpush1.bf16.msra.mxu0 %v2205_v7 }
 0x16d   :  { %1130 = vmatprep.subr.bf16.mxu0 %v2210_v8 }
 0x170   :  { %1131 = vmatpush1.bf16.msra.mxu0 %v2208_v9 }
 0x171   :  { %1132 = vmatprep.subr.bf16.mxu0 %v2213_v10 }
 0x174   :  { %1133 = vmatpush1.bf16.msra.mxu0 %v2211_v11 }
 0x175   :  { %1134 = vmatprep.subr.bf16.mxu0 %v2216_v12  ;;  %v2306_v12 = vld [vmem:[%s3142_s10] sm:$0xff]  }
 0x178   :  { %1135 = vmatpush1.bf16.msra.mxu0 %v2214_v13 }
 0x179   :  { %1136 = vmatprep.subr.bf16.mxu0 %v2219_v14  ;;  %v2309_v14 = vld [vmem:[%s3142_s10 + $0x50] sm:$0xff]  }
 0x17c   :  { %1137 = vmatpush1.bf16.msra.mxu0 %v2217_v15  ;;  %v2310_v15 = vld [vmem:[%s3142_s10 + $0x10] sm:$0xff]  }
 0x17d   :  { %1138 = vmatprep.subr.bf16.mxu0 %v2222_v16  ;;  %v2311_v16 = vld [vmem:[%s3142_s10 + $0x58] sm:$0xff]  }
 0x180   :  { %1139 = vmatpush1.bf16.msra.mxu0 %v2220_v17  ;;  %v2312_v17 = vld [vmem:[%s3142_s10 + $0x18] sm:$0xff]  }
 0x181   :  { %1140 = vmatprep.subr.bf16.mxu0 %v2225_v18  ;;  %v2313_v18 = vld [vmem:[%s3142_s10 + $0x60] sm:$0xff]  }
 0x184   :  { %1141 = vmatpush1.bf16.msra.mxu0 %v2223_v19  ;;  %v2314_v19 = vld [vmem:[%s3142_s10 + $0x20] sm:$0xff]  }
 0x185   :  { %1142 = vmatprep.subr.bf16.mxu0 %v2228_v24  ;;  %v2315_v24 = vld [vmem:[%s3142_s10 + $0x68] sm:$0xff]  }
 0x188   :  { %1143 = vmatpush1.bf16.msra.mxu0 %v2226_v25  ;;  %v2316_v25 = vld [vmem:[%s3142_s10 + $0x28] sm:$0xff]  }
 0x189   :  { %1144 = vmatprep.subr.bf16.mxu0 %v2231_v26  ;;  %v2317_v26 = vld [vmem:[%s3142_s10 + $0x70] sm:$0xff]  }
 0x18c   :  { %1145 = vmatpush1.bf16.msra.mxu0 %v2229_v27  ;;  %v2318_v27 = vld [vmem:[%s3142_s10 + $0x30] sm:$0xff]  }
 0x18d   :  { %1146 = vmatprep.subr.bf16.mxu0 %v2234_v28  ;;  %v2319_v28 = vld [vmem:[%s3142_s10 + $0x78] sm:$0xff]  }
 0x190   :  { %1147 = vmatpush1.bf16.msra.mxu0 %v2232_v29  ;;  %v2320_v29 = vld [vmem:[%s3142_s10 + $0x38] sm:$0xff]  }
 0x191   :  { %1148 = vmatprep.subr.bf16.mxu0 %v2237_v30 }
 0x194   :  { %1149 = vmatpush1.bf16.msra.mxu0 %v2235_v31 }
 0x195   :  { %1150 = vmatprep.subr.bf16.mxu0 %v2240_v33  ;;  %v1960_v33 = vld [vmem:[%s3141_s9] ss:$0 sm:$0xff]  ;;  %s2331_s9 = scalar_lea.vmem %s1777_s26, 128 }
 0x196   :  { %p2332_p0 = scmp.ne.s32.totalorder %s1777_s26, %s2331_s9  ;;  %p2337_p2 = scmp.lt.s32.totalorder %s2331_s9, %s2331_s9 }
 0x198   :  { %1151 = vmatpush1.bf16.msra.mxu0 %v2238_v34  ;;  %p2338_p3 = por %p2337_p2, %p2336_p1 }
 0x19a   :  { %p2339_p4 = pnand %p2338_p3, %p2332_p0 }
 0x19b   :  { %1153 = vmatmul.mubr.bf16.vlgmr.msra.gmra.mrb[4].mxu0 %v681_v38 }
 0x26e   :  { %v1154_v48 = vpop.f32.mrb[4].mxu0 }
 0x26f   :  { %v2038_v49 = vadd.f32 %v1154_v48, %v752_v46  ;;  %v1156_v50 = vpop.f32.mrb[5].mxu0  ;;  %v1977_v46 = vld [vmem:[%s3143_s11] ss:$0 sm:$0xff] }
 0x270   :  { %v2039_v51 = vadd.f32 %v1156_v50, %v756_v47  ;;  %v1158_v52 = vpop.f32.mrb[6].mxu0 }
 0x271   :  { %v1159_v53 = vpop.f32.mrb[7].mxu0  ;;  %v3003_v56 = vpack.c.bf16 %v2038_v49, %v2038_v49 }
 0x272   :  { %v1162_v54 = vpack.c.bf16 %v2039_v51, %v2039_v51 }
 0x274   :  { %1399 = vmatprep.mubr.bf16.mxu1 %v1162_v54 }
 0x275   :  { %1400 = vmatmul.mubr.bf16.vlgmr.msra.gmra.mrb[4].mxu1 %v3003_v56 }
 0x276   :  { %1995 = vmatpush3.bf16.msra.mxu1 %v2290_v55 }
 0x277   :  { %1996 = vmatprep.subr.bf16.mxu1 %v2291_v57 }
 0x27a   :  { %1997 = vmatpush3.bf16.msra.mxu1 %v2292_v58 }
 0x27b   :  { %1998 = vmatprep.subr.bf16.mxu1 %v2293_v35 }
 0x27e   :  { %1999 = vmatpush3.bf16.msra.mxu1 %v2294_v59 }
 0x27f   :  { %2000 = vmatprep.subr.bf16.mxu1 %v2295_v60 }
 0x282   :  { %2001 = vmatpush3.bf16.msra.mxu1 %v2296_v61 }
 0x283   :  { %2002 = vmatprep.subr.bf16.mxu1 %v2297_v62 }
 0x286   :  { %2003 = vmatpush3.bf16.msra.mxu1 %v2298_v32 }
 0x287   :  { %2004 = vmatprep.subr.bf16.mxu1 %v2299_v36 }
 0x28a   :  { %2005 = vmatpush3.bf16.msra.mxu1 %v2300_v23 }
 0x28b   :  { %2006 = vmatprep.subr.bf16.mxu1 %v2301_v63 }
 0x28e   :  { %2007 = vmatpush3.bf16.msra.mxu1 %v2302_v22 }
 0x28f   :  { %2008 = vmatprep.subr.bf16.mxu1 %v2303_v20 }
 0x292   :  { %2009 = vmatpush3.bf16.msra.mxu1 %v2304_v21 }
 0x293   :  { %2016 = vmatprep.subr.bf16.mxu1 %v2305_v0 }
 0x348   :  { %v1401_v3 = vpop.f32.mrb[4].mxu1 }
 0x349   :  { %v1402_v4 = vadd.f32 %v1401_v3, %v1200_v39  ;;  %v1403_v5 = vpop.f32.mrb[5].mxu1 }
 0x34a   :  { %v1404_v6 = vadd.f32 %v1403_v5, %v1204_v2  ;;  %v1405_v7 = vpop.f32.mrb[6].mxu1 }
 0x34b   :  { %v1408_v8 = vmax.f32 %v1402_v4, 0.0  ;;  %v1406_v9 = vpop.f32.mrb[7].mxu1 }
 0x34c   :  { %v1409_v10 = vmax.f32 %v1404_v6, 0.0 }
 0x34d   :  { %v1410_v13 = vpack.c.bf16 %v1408_v8, %v1408_v8 }
 0x34e   :  { %v1411_v11 = vpack.c.bf16 %v1409_v10, %v1409_v10 }
 0x350   :  { %1579 = vmatprep.mubr.bf16.mxu1 %v1411_v11 }
 0x351   :  { %1580 = vmatmul.mubr.bf16.vlgmr.msra.gmra.mrb[8].mxu1 %v1410_v13 }
 0x352   :  { %2017 = vmatpush3.bf16.msra.mxu1 %v2306_v12  ;;  %1761 = vmatprep.mubr.bf16.mxu1 %v1162_v54 }
 0x353   :  { %2018 = vmatprep.subr.bf16.mxu1 %v2307_v45 }
 0x356   :  { %2019 = vmatpush3.bf16.msra.mxu1 %v2308_v44 }
 0x357   :  { %2020 = vmatprep.subr.bf16.mxu1 %v2309_v14 }
 0x35a   :  { %2021 = vmatpush3.bf16.msra.mxu1 %v2310_v15 }
 0x35b   :  { %2022 = vmatprep.subr.bf16.mxu1 %v2311_v16 }
 0x35e   :  { %2023 = vmatpush3.bf16.msra.mxu1 %v2312_v17 }
 0x35f   :  { %2024 = vmatprep.subr.bf16.mxu1 %v2313_v18 }
 0x362   :  { %2025 = vmatpush3.bf16.msra.mxu1 %v2314_v19 }
 0x363   :  { %2026 = vmatprep.subr.bf16.mxu1 %v2315_v24 }
 0x366   :  { %2027 = vmatpush3.bf16.msra.mxu1 %v2316_v25 }
 0x367   :  { %2028 = vmatprep.subr.bf16.mxu1 %v2317_v26 }
 0x36a   :  { %2029 = vmatpush3.bf16.msra.mxu1 %v2318_v27 }
 0x36b   :  { %2030 = vmatprep.subr.bf16.mxu1 %v2319_v28 }
 0x36e   :  { %2031 = vmatpush3.bf16.msra.mxu1 %v2320_v29 }
 0x371   :  { %1762 = vmatmul.mubr.bf16.vlgmr.msra.gmra.mrb[12].mxu1 %v3003_v56 }
 0x424   :  { %v2010_v30 = vpop.f32.mrb[8].mxu1 }
 0x425   :  { %v2011_v31 = vpop.f32.mrb[9].mxu1 }
 0x426   :  { %v2012_v34 = vadd.f32 %v2011_v31, %v2010_v30  ;;  %v2013_v37 = vpop.f32.mrb[10].mxu1 }
 0x427   :  { %v2014_v38 = vpop.f32.mrb[11].mxu1 }
 0x428   :  { %v1582_v40 = vadd.f32 %v2012_v34, %v1960_v33 }
 0x42a   :  { %v1587_v41 = vmul.f32 %v1582_v40, %v1582_v40 }
 0x42c   :  { %1588 = vadd.xlane.f32.xlu0 %v1587_v41 }
 0x444   :  { %v2032_v42 = vpop.f32.mrb[12].mxu1 }
 0x445   :  { %v2033_v43 = vpop.f32.mrb[13].mxu1 }
 0x446   :  { %v2034_v47 = vadd.f32 %v2033_v43, %v2032_v42  ;;  %v2035_v48 = vpop.f32.mrb[14].mxu1 }
 0x447   :  { %v2036_v49 = vpop.f32.mrb[15].mxu1 }
 0x448   :  { %v1764_v50 = vadd.f32 %v2034_v47, %v1977_v46 }
 0x44a   :  { %1769 = vst [vmem:[#allocation2] sm:$0xff] %v1764_v50 }
 0x44b   :  { %2342 = shalt.err (!%p2339_p4)
}
 0x44c   :  { %s2343_s0 = scalar_lea.hbm %s3144_s12, 128 }
 0x44d   :  { %p2344_p5 = scmp.ne.s32.totalorder %s3144_s12, %s2343_s0  ;;  %p2347_p6 = scmp.lt.u32.totalorder %s2343_s0, %s3144_s12 }
 0x44f   :  { %p2349_p7 = pnand %p2347_p6, %p2344_p5 }
 0x451   :  { %2352 = shalt.err (!%p2349_p7)
}
 0x452   :  { %1779 = dma.vmem_to_hbm [thread:$0]  %s1777_s26, 128, %s3144_s12, [#allocation3]  }
 0x453   :  { %s2381_s15 = smov [#allocation4]  }
 0x454   :  { %s1786_s16 = sshll.u32 %s2381_s15, 4  ;;  %s1787_s16 = int_to_ptr.vmem [resolvable:$true] %s1786_s16 }
 0x455   :  { %s2353_s17 = scalar_lea.vmem %s1787_s16, 128  ;;  %p2358_p9 = scmp.lt.s32.totalorder %s1787_s16, %s1787_s16 }
 0x456   :  { %p2354_p8 = scmp.ne.s32.totalorder %s1787_s16, %s2353_s17  ;;  %p2359_p10 = scmp.lt.s32.totalorder %s2353_s17, %s2353_s17 }
 0x458   :  { %p2360_p11 = por %p2359_p10, %p2358_p9 }
 0x45a   :  { %p2361_p12 = pnand %p2360_p11, %p2354_p8 }
 0x4b9   :  { %v1589_v51 = vpop.xlane.xlu0 %1588 }
 0x4ba   :  { %v1590_v52 = vmax.f32 %v1589_v51, 1e-24 }
 0x4bc   :  { %2329 = vrsqrt.f32 %v1590_v52 }
 0x4c6   :  { %v2330_v53 = vpop.eup %2329 }
 0x4c7   :  { %v1592_v54 = vmul.f32 %v2330_v53, %v1582_v40 }
 0x4c9   :  { %1593 = vst [vmem:[#allocation4] sm:$0xff] %v1592_v54 }
 0x4ca   :  { %2364 = shalt.err (!%p2361_p12)
}
 0x4cb   :  { %s2365_s12 = scalar_lea.hbm %s3145_s13, 128 }
 0x4cc   :  { %p2366_p13 = scmp.ne.s32.totalorder %s3145_s13, %s2365_s12  ;;  %p2369_p0 = scmp.lt.u32.totalorder %s2365_s12, %s3145_s13 }
 0x4ce   :  { %p2371_p1 = pnand %p2369_p0, %p2366_p13 }
 0x4d0   :  { %2374 = shalt.err (!%p2371_p1)
}
 0x4d1   :  { %1789 = dma.vmem_to_hbm [thread:$0]  %s1787_s16, 128, %s3145_s13, [#allocation5]  }
 0x4d2   :  { %2375 = dma.done.wait [#allocation3], 128  }
 0x4d3   :  { %2376 = vsyncadd [#allocation3], 4294967168 }
 0x4d4   :  { %2377 = dma.done.wait [#allocation5], 128  }
 0x4d5   :  { %2378 = vsyncadd [#allocation5], 4294967168 }
 0x4d6   :  { %1796 = vsyncpa [#allocation3], 1 }
 0x4d7   :  { %1797 = vsyncpa [#allocation5], 1 }

</bundles_post_ra>
